<compile_context>
chip_gen: v7x
topology: tpu7x:2x2x1
jax: 0.10.0
libtpu: 0.0.40
codegen_flags: <defaults>
</compile_context>

<pallas_src>
import jax
import jax.numpy as jnp
import numpy as np
from jax.experimental import pallas as pl
from jax.experimental.pallas import tpu as pltpu


def conv_temporal_graphical(x, A, weight, bias, *,
                            compute_dtype=jnp.bfloat16,
                            out_dtype=jnp.float32,
                            batch_block=4,
                            w_tile_max=512,
                            vmem_limit_bytes=64 * 1024 * 1024,
                            reassociate=None):
    """Forward pass of ConvTemporalGraphical (t_kernel_size=1 path).

    x      : (N, Cin, 1, TV)     float32
    A      : (K, TV, TV)         float32
    weight : (K*Cout, Cin, 1, 1) float32   (Conv2d weight, kernel (1,1))
    bias   : (K*Cout,) float32 or None
    returns (out, A) with out: (N, Cout, 1, TV) in `out_dtype`
    """
    def rup(a, m):
        return (a + m - 1) // m * m

    N, Cin, one, V = x.shape
    assert one == 1
    K = A.shape[0]
    assert A.shape == (K, V, V)
    KCout = weight.shape[0]
    assert KCout % K == 0
    Cout = KCout // K

    cdt = jnp.dtype(compute_dtype)
    sub = 8 if cdt.itemsize >= 4 else 16          # sublane multiple

    # Lane tiling: TW independent of Vp divisibility; pad V up to a TW multiple.
    V128 = rup(V, 128)
    TW = rup(min(w_tile_max, V128), 128)
    Vp = rup(V128, TW)
    Cinp = rup(Cin, sub)
    Coutp = rup(Cout, sub)
    Bn = max(1, min(batch_block, N))
    Np = rup(N, Bn)

    if reassociate is None:
        reassociate = Cin < Cout                  # input layers: aggregate first

    # --- operands, padded / laid out for the kernel (zero padding is benign) ---
    x3 = x.reshape(N, Cin, V)
    x3p = jnp.zeros((Np, Cinp, Vp), cdt).at[:N, :Cin, :V].set(x3.astype(cdt))

    w3 = weight.reshape(K, Cout, Cin)
    w3p = jnp.zeros((K, Coutp, Cinp), cdt).at[:, :Cout, :Cin].set(w3.astype(cdt))

    Apad = jnp.zeros((K, Vp, Vp), cdt).at[:, :V, :V].set(A.astype(cdt))

    # bias folded through A once in f32:  bt[c,w] = sum_k b[k,c] * sum_v A[k,v,w]
    if bias is None:
        btp = jnp.zeros((Coutp, Vp), jnp.float32)
    else:
        b2 = bias.reshape(K, Cout).astype(jnp.float32)
        bt = jnp.einsum("kc,kw->cw", b2, jnp.sum(A.astype(jnp.float32), axis=1))
        btp = jnp.zeros((Coutp, Vp), jnp.float32).at[:Cout, :V].set(bt)

    grid = (Np // Bn, Vp // TW)                   # batch tile OUTER, node tile INNER

    x_spec = pl.BlockSpec((Bn, Cinp, Vp), lambda nb, wi: (nb, 0, 0))
    bt_spec = pl.BlockSpec((Coutp, TW), lambda nb, wi: (0, wi))
    out_spec = pl.BlockSpec((Bn, Coutp, TW), lambda nb, wi: (nb, 0, wi))
    out_shape = jax.ShapeDtypeStruct((Np, Coutp, Vp), out_dtype)

    bytes_x = x3p.size * cdt.itemsize
    bytes_a = Apad.size * cdt.itemsize * (Np // Bn)     # A re-streamed per batch tile
    bytes_o = Np * Coutp * Vp * jnp.dtype(out_dtype).itemsize
    bytes_w = w3p.size * cdt.itemsize + btp.size * 4

    if not reassociate:
        # ------------------ Path A: conv -> aggregate (Cout <= Cin) -------------
        w2p = w3p.reshape(K * Coutp, Cinp)        # out-channel row = k*Coutp + c
        Ar = Apad.reshape(K * Vp, Vp)             # contraction row  = k*Vp + v

        def kernel_a(x_ref, w_ref, bt_ref, a_ref, o_ref, y_ref):
            wi = pl.program_id(1)

            # Pointwise (1x1) conv once per batch tile (all K weight slices fused
            # into the MXU M dim).  Each batch element is computed and written
            # straight into the Y cache -> peak live ~ one (K*Coutp, Vp) value.
            @pl.when(wi == 0)
            def _():
                w_all = w_ref[...]
                for b in range(Bn):
                    yb = jnp.dot(w_all, x_ref[b],
                                 preferred_element_type=jnp.float32)   # (K*Coutp, Vp)
                    yb = yb.astype(y_ref.dtype)
                    for k in range(K):
                        y_ref[b * Coutp:(b + 1) * Coutp, k * Vp:(k + 1) * Vp] = \
                            yb[k * Coutp:(k + 1) * Coutp]

            # Graph aggregation: ONE long-contraction matmul over (k, v).
            z = jnp.dot(y_ref[...], a_ref[...],
                        preferred_element_type=jnp.float32)            # (Bn*Coutp, TW)
            bt = bt_ref[...]
            for b in range(Bn):
                o_ref[b] = (z[b * Coutp:(b + 1) * Coutp] + bt).astype(o_ref.dtype)

        flops = 2 * Np * K * Coutp * Cinp * Vp + 2 * Np * Coutp * K * Vp * Vp
        out = pl.pallas_call(
            kernel_a,
            out_shape=out_shape,
            grid_spec=pltpu.PrefetchScalarGridSpec(
                num_scalar_prefetch=0,
                grid=grid,
                in_specs=[
                    x_spec,                                                     # x
                    pl.BlockSpec((K * Coutp, Cinp), lambda nb, wi: (0, 0)),     # W_all
                    bt_spec,                                                    # bias term
                    pl.BlockSpec((K * Vp, TW), lambda nb, wi: (0, wi)),         # A (stacked)
                ],
                out_specs=out_spec,
                # Y cache lives across the wi axis -> that axis is "arbitrary".
                scratch_shapes=[pltpu.VMEM((Bn * Coutp, K * Vp), cdt)],
            ),
            compiler_params=pltpu.CompilerParams(
                dimension_semantics=("parallel", "arbitrary"),
                vmem_limit_bytes=vmem_limit_bytes,
            ),
            cost_estimate=pl.CostEstimate(
                flops=int(flops), transcendentals=0,
                bytes_accessed=int(bytes_x + bytes_a + bytes_o + bytes_w)),
        )(x3p, w2p, btp, Ar)
    else:
        # ------------------ Path B: aggregate -> conv (Cin < Cout) --------------
        # out_b = sum_k W_k @ (X_b @ A_k): the O(V^2) matmul scales with Cin and
        # no (K*Cout, V) intermediate is materialized (no Y cache needed at all).
        w_cat = jnp.transpose(w3p, (1, 0, 2)).reshape(Coutp, K * Cinp)

        def kernel_b(x_ref, w_ref, bt_ref, a_ref, o_ref):
            w_all = w_ref[...]                       # (Coutp, K*Cinp)
            bt = bt_ref[...]                         # (Coutp, TW) f32
            xs = x_ref[...].reshape(Bn * Cinp, Vp)   # batch stacked in MXU M dim
            gs = [jnp.dot(xs, a_ref[k], preferred_element_type=jnp.float32)
                  for k in range(K)]                 # each (Bn*Cinp, TW)
            for b in range(Bn):
                zb = jnp.concatenate(
                    [g[b * Cinp:(b + 1) * Cinp] for g in gs], axis=0
                ).astype(w_all.dtype)                # (K*Cinp, TW), tiny copy
                ob = jnp.dot(w_all, zb, preferred_element_type=jnp.float32)
                o_ref[b] = (ob + bt).astype(o_ref.dtype)

        flops = 2 * Np * K * Cinp * Vp * Vp + 2 * Np * Coutp * K * Cinp * Vp
        out = pl.pallas_call(
            kernel_b,
            out_shape=out_shape,
            grid_spec=pltpu.PrefetchScalarGridSpec(
                num_scalar_prefetch=0,
                grid=grid,
                in_specs=[
                    x_spec,                                                     # x
                    pl.BlockSpec((Coutp, K * Cinp), lambda nb, wi: (0, 0)),     # W_cat
                    bt_spec,                                                    # bias term
                    pl.BlockSpec((K, Vp, TW), lambda nb, wi: (0, 0, wi)),       # A tile
                ],
                out_specs=out_spec,
            ),
            compiler_params=pltpu.CompilerParams(
                dimension_semantics=("parallel", "parallel"),
                vmem_limit_bytes=vmem_limit_bytes,
            ),
            cost_estimate=pl.CostEstimate(
                flops=int(flops), transcendentals=0,
                bytes_accessed=int(bytes_x + bytes_a + bytes_o + bytes_w)),
        )(x3p, w_cat, btp, Apad)

    out = out[:N, :Cout, :V].reshape(N, Cout, 1, V)
    return out, A


def _reference(x, A, weight, bias):
    """Pure-JAX reference mirroring the PyTorch forward."""
    N, Cin, _, V = x.shape
    K = A.shape[0]
    Cout = weight.shape[0] // K
    w2 = weight.reshape(K * Cout, Cin)
    y = jnp.einsum("oc,ncv->nov", w2, x.reshape(N, Cin, V))
    if bias is not None:
        y = y + bias[None, :, None]
    y = y.reshape(N, K, Cout, 1, V)
    out = jnp.einsum("nkctv,kvw->nctw", y, A)
    return out, A


if __name__ == "__main__":
    # Small shapes consistent with the module: N=2, Cin=4, Cout=8, K=3, T=4, V_nodes=4
    N, Cin, Cout, K, T, Vn = 2, 4, 8, 3, 4, 4
    TV = T * Vn

    key = jax.random.PRNGKey(0)
    kx, ka, kw, kb = jax.random.split(key, 4)

    x = jax.random.normal(kx, (N, Cin, 1, TV), dtype=jnp.float32)
    A = jax.random.normal(ka, (K, TV, TV), dtype=jnp.float32)
    # Conv2d(Cin -> K*Cout, kernel=(1,1)) style init
    bound = 1.0 / np.sqrt(float(Cin))
    weight = jax.random.uniform(kw, (K * Cout, Cin, 1, 1), jnp.float32, -bound, bound)
    bias = jax.random.uniform(kb, (K * Cout,), jnp.float32, -bound, bound)

    ref_out, _ = _reference(x, A, weight, bias)

    # f32 MXU path, both algorithm variants (tight tolerance)
    for reassoc in (True, False):
        out, A_out = conv_temporal_graphical(
            x, A, weight, bias, compute_dtype=jnp.float32, reassociate=reassoc)
        out = jax.block_until_ready(out)
        np.testing.assert_allclose(np.asarray(out), np.asarray(ref_out),
                                   rtol=1e-4, atol=1e-4)
        assert out.shape == (N, Cout, 1, TV)
        assert A_out.shape == A.shape

    # bf16 MXU fast path (default), f32 accumulation -- looser tolerance
    out_bf16, _ = conv_temporal_graphical(x, A, weight, bias)
    out_bf16 = jax.block_until_ready(out_bf16)
    np.testing.assert_allclose(np.asarray(out_bf16), np.asarray(ref_out),
                               rtol=1e-1, atol=1e-1)

    print("KERNEL_OK")
</pallas_src>

<mosaic_0001>
module attributes {stable_mosaic.version = 11 : i64} {
  func.func @kernel_b(%arg0: i32, %arg1: i32, %arg2: memref<2x8x128xf32, #tpu.memory_space<vmem>>, %arg3: memref<8x24xf32, #tpu.memory_space<vmem>>, %arg4: memref<8x128xf32, #tpu.memory_space<vmem>>, %arg5: memref<3x128x128xf32, #tpu.memory_space<vmem>>, %arg6: memref<2x8x128xf32, #tpu.memory_space<vmem>>) attributes {dimension_semantics = [#tpu.dimension_semantics<parallel>, #tpu.dimension_semantics<parallel>], iteration_bounds = array<i64: 1, 1>, scalar_prefetch = 0 : i64, scratch_operands = 0 : i64, tpu.core_type = #tpu.core_type<tc>, window_params = [{transform_indices = @transform_0, window_bounds = array<i64: 2, 8, 128>}, {pipeline_mode = #tpu.pipeline_mode<synchronous>, transform_indices = @transform_1, window_bounds = array<i64: 8, 24>}, {transform_indices = @transform_2, window_bounds = array<i64: 8, 128>}, {transform_indices = @transform_3, window_bounds = array<i64: 3, 128, 128>}, {transform_indices = @transform_4, window_bounds = array<i64: 2, 8, 128>}]} {
    %c0 = arith.constant 0 : index
    %c0_0 = arith.constant 0 : index
    %0 = vector.load %arg3[%c0, %c0_0] : memref<8x24xf32, #tpu.memory_space<vmem>>, vector<8x24xf32>
    %c0_1 = arith.constant 0 : index
    %c0_2 = arith.constant 0 : index
    %1 = vector.load %arg4[%c0_1, %c0_2] : memref<8x128xf32, #tpu.memory_space<vmem>>, vector<8x128xf32>
    %c0_3 = arith.constant 0 : index
    %c0_4 = arith.constant 0 : index
    %c0_5 = arith.constant 0 : index
    %2 = vector.load %arg2[%c0_3, %c0_4, %c0_5] : memref<2x8x128xf32, #tpu.memory_space<vmem>>, vector<2x8x128xf32>
    %3 = vector.shape_cast %2 : vector<2x8x128xf32> to vector<16x128xf32>
    %c0_6 = arith.constant 0 : index
    %c0_7 = arith.constant 0 : index
    %c0_8 = arith.constant 0 : index
    %4 = vector.load %arg5[%c0_6, %c0_7, %c0_8] : memref<3x128x128xf32, #tpu.memory_space<vmem>>, vector<1x128x128xf32>
    %5 = vector.shape_cast %4 : vector<1x128x128xf32> to vector<128x128xf32>
    %cst = arith.constant dense<0.000000e+00> : vector<16x128xf32>
    %6 = tpu.matmul %3, %5, %cst {dimension_numbers = #tpu.dot_dimension_numbers<[1], [0], [0], [1], [0, 0, 1, 1], [], []>} : vector<16x128xf32>, vector<128x128xf32>, vector<16x128xf32> -> vector<16x128xf32>
    %c1 = arith.constant 1 : index
    %c0_9 = arith.constant 0 : index
    %c0_10 = arith.constant 0 : index
    %7 = vector.load %arg5[%c1, %c0_9, %c0_10] : memref<3x128x128xf32, #tpu.memory_space<vmem>>, vector<1x128x128xf32>
    %8 = vector.shape_cast %7 : vector<1x128x128xf32> to vector<128x128xf32>
    %cst_11 = arith.constant dense<0.000000e+00> : vector<16x128xf32>
    %9 = tpu.matmul %3, %8, %cst_11 {dimension_numbers = #tpu.dot_dimension_numbers<[1], [0], [0], [1], [0, 0, 1, 1], [], []>} : vector<16x128xf32>, vector<128x128xf32>, vector<16x128xf32> -> vector<16x128xf32>
    %c2 = arith.constant 2 : index
    %c0_12 = arith.constant 0 : index
    %c0_13 = arith.constant 0 : index
    %10 = vector.load %arg5[%c2, %c0_12, %c0_13] : memref<3x128x128xf32, #tpu.memory_space<vmem>>, vector<1x128x128xf32>
    %11 = vector.shape_cast %10 : vector<1x128x128xf32> to vector<128x128xf32>
    %cst_14 = arith.constant dense<0.000000e+00> : vector<16x128xf32>
    %12 = tpu.matmul %3, %11, %cst_14 {dimension_numbers = #tpu.dot_dimension_numbers<[1], [0], [0], [1], [0, 0, 1, 1], [], []>} : vector<16x128xf32>, vector<128x128xf32>, vector<16x128xf32> -> vector<16x128xf32>
    %13 = vector.extract_strided_slice %6 {offsets = [0, 0], sizes = [8, 128], strides = [1, 1]} : vector<16x128xf32> to vector<8x128xf32>
    %14 = vector.extract_strided_slice %9 {offsets = [0, 0], sizes = [8, 128], strides = [1, 1]} : vector<16x128xf32> to vector<8x128xf32>
    %15 = vector.extract_strided_slice %12 {offsets = [0, 0], sizes = [8, 128], strides = [1, 1]} : vector<16x128xf32> to vector<8x128xf32>
    %16 = tpu.concatenate %13, %14, %15 in 0 : vector<8x128xf32>, vector<8x128xf32>, vector<8x128xf32> -> vector<24x128xf32>
    %cst_15 = arith.constant dense<0.000000e+00> : vector<8x128xf32>
    %17 = tpu.matmul %0, %16, %cst_15 {dimension_numbers = #tpu.dot_dimension_numbers<[1], [0], [0], [1], [0, 0, 1, 1], [], []>} : vector<8x24xf32>, vector<24x128xf32>, vector<8x128xf32> -> vector<8x128xf32>
    %18 = arith.addf %17, %1 : vector<8x128xf32>
    %c0_16 = arith.constant 0 : index
    %c0_17 = arith.constant 0 : index
    %c0_18 = arith.constant 0 : index
    %19 = vector.load %arg6[%c0_16, %c0_17, %c0_18] : memref<2x8x128xf32, #tpu.memory_space<vmem>>, vector<1x8x128xf32>
    %20 = vector.shape_cast %19 : vector<1x8x128xf32> to vector<8x128xf32>
    %21 = vector.shape_cast %18 : vector<8x128xf32> to vector<1x8x128xf32>
    tpu.vector_store %arg6[%c0_16, %c0_17, %c0_18], %21 {strides = array<i32>} : memref<2x8x128xf32, #tpu.memory_space<vmem>>, vector<1x8x128xf32>,
    %22 = vector.extract_strided_slice %6 {offsets = [8, 0], sizes = [8, 128], strides = [1, 1]} : vector<16x128xf32> to vector<8x128xf32>
    %23 = vector.extract_strided_slice %9 {offsets = [8, 0], sizes = [8, 128], strides = [1, 1]} : vector<16x128xf32> to vector<8x128xf32>
    %24 = vector.extract_strided_slice %12 {offsets = [8, 0], sizes = [8, 128], strides = [1, 1]} : vector<16x128xf32> to vector<8x128xf32>
    %25 = tpu.concatenate %22, %23, %24 in 0 : vector<8x128xf32>, vector<8x128xf32>, vector<8x128xf32> -> vector<24x128xf32>
    %cst_19 = arith.constant dense<0.000000e+00> : vector<8x128xf32>
    %26 = tpu.matmul %0, %25, %cst_19 {dimension_numbers = #tpu.dot_dimension_numbers<[1], [0], [0], [1], [0, 0, 1, 1], [], []>} : vector<8x24xf32>, vector<24x128xf32>, vector<8x128xf32> -> vector<8x128xf32>
    %27 = arith.addf %26, %1 : vector<8x128xf32>
    %c1_20 = arith.constant 1 : index
    %c0_21 = arith.constant 0 : index
    %c0_22 = arith.constant 0 : index
    %28 = vector.load %arg6[%c1_20, %c0_21, %c0_22] : memref<2x8x128xf32, #tpu.memory_space<vmem>>, vector<1x8x128xf32>
    %29 = vector.shape_cast %28 : vector<1x8x128xf32> to vector<8x128xf32>
    %30 = vector.shape_cast %27 : vector<8x128xf32> to vector<1x8x128xf32>
    tpu.vector_store %arg6[%c1_20, %c0_21, %c0_22], %30 {strides = array<i32>} : memref<2x8x128xf32, #tpu.memory_space<vmem>>, vector<1x8x128xf32>,
    return
  }
  func.func @transform_0(%arg0: i32, %arg1: i32) -> (i32, i32, i32) {
    %c0_i32 = arith.constant 0 : i32
    %c0_i32_0 = arith.constant 0 : i32
    %c0_i32_1 = arith.constant 0 : i32
    return %arg0, %c0_i32, %c0_i32_0 : i32, i32, i32
  }
  func.func @transform_1(%arg0: i32, %arg1: i32) -> (i32, i32) {
    %c0_i32 = arith.constant 0 : i32
    %c0_i32_0 = arith.constant 0 : i32
    %c0_i32_1 = arith.constant 0 : i32
    return %c0_i32, %c0_i32_0 : i32, i32
  }
  func.func @transform_2(%arg0: i32, %arg1: i32) -> (i32, i32) {
    %c0_i32 = arith.constant 0 : i32
    %c0_i32_0 = arith.constant 0 : i32
    return %c0_i32, %arg1 : i32, i32
  }
  func.func @transform_3(%arg0: i32, %arg1: i32) -> (i32, i32, i32) {
    %c0_i32 = arith.constant 0 : i32
    %c0_i32_0 = arith.constant 0 : i32
    %c0_i32_1 = arith.constant 0 : i32
    return %c0_i32, %c0_i32_0, %arg1 : i32, i32, i32
  }
  func.func @transform_4(%arg0: i32, %arg1: i32) -> (i32, i32, i32) {
    %c0_i32 = arith.constant 0 : i32
    %c0_i32_0 = arith.constant 0 : i32
    return %arg0, %c0_i32, %arg1 : i32, i32, i32
  }
}

</mosaic_0001>

<bundles_post_ra>
// kernel: tpu_custom_call.1
= control target key start
LH: loop header
LB: loop body
LE: loop exit
PB: predicated region body
PF: predicated region fallthrough
CT: control target
= control target key end

     0   :  { %9 = vsyncpa [#allocation3], 0  ;;  %s1051_s0 = inlined_call_operand.hbm [shape: f32[2,8,128], index: 0, kind: input, shape index: {}]   ;;  %s1052_s1 = inlined_call_operand.hbm [shape: f32[8,24], index: 1, kind: input, shape index: {}]   ;;  %s1053_s2 = inlined_call_operand.hbm [shape: f32[8,128], index: 2, kind: input, shape index: {}]   ;;  %s1054_s3 = inlined_call_operand.hbm [shape: f32[3,128,128], index: 3, kind: input, shape index: {}]   ;;  %s1055_s4 = inlined_call_operand.hbm [shape: f32[2,8,128], index: 4, kind: output, shape index: {}]  }
   0x1   :  { %10 = vsyncpa [#allocation6], 0 }
   0x2   :  { %11 = vsyncpa [#allocation9], 0 }
   0x3   :  { %12 = vsyncpa [#allocation4], 0  ;;  %s931_s15 = smov [#allocation5]   ;;  %s932_s17 = smov [#allocation2]  }
   0x4   :  { %s31_s16 = sshll.u32 %s931_s15, 4  ;;  %s18_s18 = sshll.u32 %s932_s17, 4  ;;  %s32_s16 = int_to_ptr.vmem [resolvable:$true] %s31_s16  ;;  %s966_s18 = int_to_ptr.vmem [resolvable:$true] %s18_s18 }
   0x5   :  { %s813_s21 = scalar_lea.hbm %s1052_s1, 128 }
   0x6   :  { %p814_p0 = scmp.ne.s32.totalorder %s1052_s1, %s813_s21  ;;  %p817_p1 = scmp.lt.u32.totalorder %s813_s21, %s1052_s1 }
   0x8   :  { %p819_p2 = pnand %p817_p1, %p814_p0 }
   0xa   :  { %822 = shalt.err (!%p819_p2)
}
   0xb   :  { %s823_s26 = scalar_lea.vmem %s32_s16, 128  ;;  %p828_p4 = scmp.lt.s32.totalorder %s32_s16, %s32_s16 }
   0xc   :  { %p824_p3 = scmp.ne.s32.totalorder %s32_s16, %s823_s26  ;;  %p829_p5 = scmp.lt.s32.totalorder %s823_s26, %s823_s26 }
   0xe   :  { %p830_p6 = por %p829_p5, %p828_p4 }
  0x10   :  { %p831_p7 = pnand %p830_p6, %p824_p3 }
  0x12   :  { %834 = shalt.err (!%p831_p7)
}
  0x13   :  { %34 = dma.hbm_to_vmem [thread:$0]  %s1052_s1, 128, %s32_s16, [#allocation6]  }
  0x14   :  { %s835_s5 = scalar_lea.hbm %s1051_s0, 256 }
  0x15   :  { %p836_p8 = scmp.ne.s32.totalorder %s1051_s0, %s835_s5  ;;  %p839_p9 = scmp.lt.u32.totalorder %s835_s5, %s1051_s0 }
  0x17   :  { %p841_p10 = pnand %p839_p9, %p836_p8 }
  0x19   :  { %844 = shalt.err (!%p841_p10)
}
  0x1a   :  { %s845_s10 = scalar_lea.vmem %s966_s18, 256  ;;  %p850_p12 = scmp.lt.s32.totalorder %s966_s18, %s966_s18 }
  0x1b   :  { %p846_p11 = scmp.ne.s32.totalorder %s966_s18, %s845_s10  ;;  %p851_p13 = scmp.lt.s32.totalorder %s845_s10, %s845_s10 }
  0x1d   :  { %p852_p0 = por %p851_p13, %p850_p12 }
  0x1f   :  { %p853_p1 = pnand %p852_p0, %p846_p11 }
  0x21   :  { %856 = shalt.err (!%p853_p1)
}
  0x22   :  { %s933_s1 = smov 128   ;;  %s934_s11 = smov 8  }
  0x23   :  { %24 = dma.hbm_to_vmem [thread:$0]  %s1051_s0, 256, %s966_s18, [#allocation3], %s933_s1, %s933_s1, %s934_s11  }
  0x24   :  { %s935_s14 = smov [#allocation7]   ;;  %s936_s16 = smov [#allocation8]  }
  0x25   :  { %s41_s15 = sshll.u32 %s935_s14, 4  ;;  %s50_s17 = sshll.u32 %s936_s16, 4  ;;  %s42_s15 = int_to_ptr.vmem [resolvable:$true] %s41_s15  ;;  %s1000_s17 = int_to_ptr.vmem [resolvable:$true] %s50_s17 }
  0x26   :  { %s857_s21 = scalar_lea.hbm %s1053_s2, 128 }
  0x27   :  { %p858_p2 = scmp.ne.s32.totalorder %s1053_s2, %s857_s21  ;;  %p861_p3 = scmp.lt.u32.totalorder %s857_s21, %s1053_s2 }
  0x29   :  { %p863_p4 = pnand %p861_p3, %p858_p2 }
  0x2b   :  { %866 = shalt.err (!%p863_p4)
}
  0x2c   :  { %s867_s0 = scalar_lea.vmem %s42_s15, 128  ;;  %p872_p6 = scmp.lt.s32.totalorder %s42_s15, %s42_s15 }
  0x2d   :  { %p868_p5 = scmp.ne.s32.totalorder %s42_s15, %s867_s0  ;;  %p873_p7 = scmp.lt.s32.totalorder %s867_s0, %s867_s0 }
  0x2f   :  { %p874_p8 = por %p873_p7, %p872_p6 }
  0x31   :  { %p875_p9 = pnand %p874_p8, %p868_p5 }
  0x33   :  { %878 = shalt.err (!%p875_p9)
}
  0x34   :  { %44 = dma.hbm_to_vmem [thread:$0]  %s1053_s2, 128, %s42_s15, [#allocation6]  }
  0x35   :  { %s879_s29 = scalar_lea.hbm %s1054_s3, 6144 }
  0x36   :  { %p880_p10 = scmp.ne.s32.totalorder %s1054_s3, %s879_s29  ;;  %p883_p11 = scmp.lt.u32.totalorder %s879_s29, %s1054_s3 }
  0x38   :  { %p885_p12 = pnand %p883_p11, %p880_p10 }
  0x3a   :  { %888 = shalt.err (!%p885_p12)
}
  0x3b   :  { %s889_s8 = scalar_lea.vmem %s1000_s17, 6144  ;;  %p894_p0 = scmp.lt.s32.totalorder %s1000_s17, %s1000_s17 }
  0x3c   :  { %p890_p13 = scmp.ne.s32.totalorder %s1000_s17, %s889_s8  ;;  %p895_p1 = scmp.lt.s32.totalorder %s889_s8, %s889_s8 }
  0x3e   :  { %p896_p2 = por %p895_p1, %p894_p0 }
  0x40   :  { %p897_p3 = pnand %p896_p2, %p890_p13 }
  0x42   :  { %900 = shalt.err (!%p897_p3)
}
  0x43   :  { %56 = dma.hbm_to_vmem [thread:$0]  %s1054_s3, 6144, %s1000_s17, [#allocation9], %s933_s1, %s933_s1, %s934_s11  }
  0x44   :  { %923 = dma.done.wait [#allocation3], 256  }
  0x45   :  { %924 = vsyncadd [#allocation3], 4294967040 }
  0x46   :  { %925 = dma.done.wait [#allocation6], 256  }
  0x47   :  { %926 = vsyncadd [#allocation6], 4294967040 }
  0x48   :  { %927 = dma.done.wait [#allocation9], 6144  }
  0x49   :  { %928 = vsyncadd [#allocation9], 4294961152  ;;  %v73_v0 = vld [vmem:[#allocation8] sm:$0xff]  ;;  %v74_v1 = vld [vmem:[#allocation8 + $0x8] sm:$0xff]  ;;  %vm938_vm0 = vmmov 0   ;;  %vm348_vm1 = vcmask 195584  }
  0x4a   :  { %v165_v2 = vld [vmem:[#allocation8 + $0x80] sm:$0xff]  ;;  %v701_v3 = vpack.c.bf16 %v74_v1, %v73_v0  ;;  %v166_v4 = vld [vmem:[#allocation8 + $0x88] sm:$0xff]  ;;  %v75_v5 = vld [vmem:[#allocation8 + $0x10] sm:$0xff]  ;;  %s940_s3 = smov [#allocation10]  }
  0x4b   :  { %v76_v6 = vld [vmem:[#allocation8 + $0x18] sm:$0xff]  ;;  %v733_v7 = vpack.c.bf16 %v166_v4, %v165_v2  ;;  %v167_v9 = vld [vmem:[#allocation8 + $0x90] sm:$0xff]  ;;  %v77_v11 = vld [vmem:[#allocation8 + $0x20] sm:$0xff]  ;;  %s500_s10 = sshll.u32 %s940_s3, 4  ;;  %s501_s10 = int_to_ptr.vmem [resolvable:$true] %s500_s10 }
  0x4c   :  { %v705_v8 = vpack.c.bf16 %v76_v6, %v75_v5  ;;  %v168_v10 = vld [vmem:[#allocation8 + $0x98] sm:$0xff]  ;;  %702 = vmatprep.subr.bf16.mxu0 %v701_v3  ;;  %v78_v13 = vld [vmem:[#allocation8 + $0x28] sm:$0xff]  ;;  %v169_v14 = vld [vmem:[#allocation8 + $0xa0] sm:$0xff]  ;;  %s901_s12 = scalar_lea.vmem %s501_s10, 256  ;;  %p906_p5 = scmp.lt.s32.totalorder %s501_s10, %s501_s10 }
  0x4d   :  { %v737_v12 = vpack.c.bf16 %v168_v10, %v167_v9  ;;  %v170_v15 = vld [vmem:[#allocation8 + $0xa8] sm:$0xff]  ;;  %734 = vmatprep.subr.bf16.mxu1 %v733_v7  ;;  %704 = vmatpush3.bf16.msra.mxu0 %v701_v3  ;;  %v709_v16 = vpack.c.bf16 %v78_v13, %v77_v11  ;;  %v79_v18 = vld [vmem:[#allocation8 + $0x30] sm:$0xff]  ;;  %v80_v19 = vld [vmem:[#allocation8 + $0x38] sm:$0xff]  ;;  %v937_v10 = vmov 0.0|0.0   ;;  %v939_v11 = vmov 0.0   ;;  %p902_p4 = scmp.ne.s32.totalorder %s501_s10, %s901_s12  ;;  %p907_p6 = scmp.lt.s32.totalorder %s901_s12, %s901_s12 }
  0x4e   :  { %736 = vmatpush3.bf16.msra.mxu1 %v733_v7  ;;  %706 = vmatprep.subr.bf16.mxu0 %v705_v8  ;;  %v741_v17 = vpack.c.bf16 %v170_v15, %v169_v14  ;;  %v171_v20 = vld [vmem:[#allocation8 + $0xb0] sm:$0xff]  ;;  %v172_v21 = vld [vmem:[#allocation8 + $0xb8] sm:$0xff]  ;;  %v713_v22 = vpack.c.bf16 %v80_v19, %v79_v18  ;;  %v81_v24 = vld [vmem:[#allocation8 + $0x40] sm:$0xff] }
  0x4f   :  { %738 = vmatprep.subr.bf16.mxu1 %v737_v12  ;;  %v745_v23 = vpack.c.bf16 %v172_v21, %v171_v20  ;;  %v82_v25 = vld [vmem:[#allocation8 + $0x48] sm:$0xff]  ;;  %v71_v26 = vld [vmem:[#allocation2] sm:$0xff]  ;;  %v83_v31 = vld [vmem:[#allocation8 + $0x50] sm:$0xff]  ;;  %p908_p7 = por %p907_p6, %p906_p5 }
  0x50   :  { %v173_v27 = vld [vmem:[#allocation8 + $0xc0] sm:$0xff]  ;;  %v174_v28 = vld [vmem:[#allocation8 + $0xc8] sm:$0xff]  ;;  %610 = vmatprep.mubr.f32.mxu0 %v71_v26  ;;  %645 = vmatprep.mubr.f32.mxu1 %v71_v26  ;;  %v717_v29 = vpack.c.bf16 %v82_v25, %v81_v24  ;;  %v84_v32 = vld [vmem:[#allocation8 + $0x58] sm:$0xff] }
  0x51   :  { %708 = vmatpush3.bf16.msra.mxu0 %v705_v8  ;;  %v749_v30 = vpack.c.bf16 %v174_v28, %v173_v27  ;;  %v175_v33 = vld [vmem:[#allocation8 + $0xd0] sm:$0xff]  ;;  %v176_v34 = vld [vmem:[#allocation8 + $0xd8] sm:$0xff]  ;;  %v721_v35 = vpack.c.bf16 %v84_v32, %v83_v31  ;;  %v85_v37 = vld [vmem:[#allocation8 + $0x60] sm:$0xff]  ;;  %p909_p8 = pnand %p908_p7, %p902_p4 }
  0x52   :  { %740 = vmatpush3.bf16.msra.mxu1 %v737_v12  ;;  %710 = vmatprep.subr.bf16.mxu0 %v709_v16  ;;  %v753_v36 = vpack.c.bf16 %v176_v34, %v175_v33  ;;  %v86_v38 = vld [vmem:[#allocation8 + $0x68] sm:$0xff]  ;;  %v177_v39 = vld [vmem:[#allocation8 + $0xe0] sm:$0xff]  ;;  %v87_v43 = vld [vmem:[#allocation8 + $0x70] sm:$0xff] }
  0x53   :  { %742 = vmatprep.subr.bf16.mxu1 %v741_v17  ;;  %v178_v40 = vld [vmem:[#allocation8 + $0xe8] sm:$0xff]  ;;  %v725_v41 = vpack.c.bf16 %v86_v38, %v85_v37  ;;  %v88_v44 = vld [vmem:[#allocation8 + $0x78] sm:$0xff]  ;;  %v179_v45 = vld [vmem:[#allocation8 + $0xf0] sm:$0xff] }
  0x54   :  { %v757_v42 = vpack.c.bf16 %v178_v40, %v177_v39  ;;  %v180_v46 = vld [vmem:[#allocation8 + $0xf8] sm:$0xff]  ;;  %v729_v47 = vpack.c.bf16 %v88_v44, %v87_v43  ;;  %v257_v49 = vld [vmem:[#allocation8 + $0x100] sm:$0xff]  ;;  %v258_v50 = vld [vmem:[#allocation8 + $0x108] sm:$0xff] }
  0x55   :  { %712 = vmatpush3.bf16.msra.mxu0 %v709_v16  ;;  %v761_v48 = vpack.c.bf16 %v180_v46, %v179_v45  ;;  %v765_v51 = vpack.c.bf16 %v258_v50, %v257_v49  ;;  %v259_v52 = vld [vmem:[#allocation8 + $0x110] sm:$0xff]  ;;  %v260_v53 = vld [vmem:[#allocation8 + $0x118] sm:$0xff]  ;;  %v72_v54 = vld [vmem:[#allocation2 + $0x8] sm:$0xff] }
  0x56   :  { %744 = vmatpush3.bf16.msra.mxu1 %v741_v17  ;;  %714 = vmatprep.subr.bf16.mxu0 %v713_v22  ;;  %v769_v55 = vpack.c.bf16 %v260_v53, %v259_v52  ;;  %v261_v56 = vld [vmem:[#allocation8 + $0x120] sm:$0xff]  ;;  %v262_v57 = vld [vmem:[#allocation8 + $0x128] sm:$0xff]  ;;  %v263_v59 = vld [vmem:[#allocation8 + $0x130] sm:$0xff] }
  0x57   :  { %746 = vmatprep.subr.bf16.mxu1 %v745_v23  ;;  %v773_v58 = vpack.c.bf16 %v262_v57, %v261_v56  ;;  %v264_v60 = vld [vmem:[#allocation8 + $0x138] sm:$0xff]  ;;  %v265_v62 = vld [vmem:[#allocation8 + $0x140] sm:$0xff]  ;;  %v266_v63 = vld [vmem:[#allocation8 + $0x148] sm:$0xff] }
  0x58   :  { %v777_v61 = vpack.c.bf16 %v264_v60, %v263_v59  ;;  %v781_v0 = vpack.c.bf16 %v266_v63, %v265_v62  ;;  %v267_v1 = vld [vmem:[#allocation8 + $0x150] sm:$0xff]  ;;  %v268_v2 = vld [vmem:[#allocation8 + $0x158] sm:$0xff]  ;;  %v269_v4 = vld [vmem:[#allocation8 + $0x160] sm:$0xff] }
  0x59   :  { %716 = vmatpush3.bf16.msra.mxu0 %v713_v22  ;;  %v785_v3 = vpack.c.bf16 %v268_v2, %v267_v1  ;;  %v270_v5 = vld [vmem:[#allocation8 + $0x168] sm:$0xff]  ;;  %v271_v7 = vld [vmem:[#allocation8 + $0x170] sm:$0xff]  ;;  %v272_v8 = vld [vmem:[#allocation8 + $0x178] sm:$0xff] }
  0x5a   :  { %748 = vmatpush3.bf16.msra.mxu1 %v745_v23  ;;  %718 = vmatprep.subr.bf16.mxu0 %v717_v29  ;;  %v789_v6 = vpack.c.bf16 %v270_v5, %v269_v4  ;;  %v793_v9 = vpack.c.bf16 %v272_v8, %v271_v7  ;;  %v69_v19 = vld [vmem:[#allocation5] sm:$0xff]  ;;  %v70_v21 = vld [vmem:[#allocation7] sm:$0xff] }
  0x5b   :  { %750 = vmatprep.subr.bf16.mxu1 %v749_v30 }
  0x5d   :  { %720 = vmatpush3.bf16.msra.mxu0 %v717_v29 }
  0x5e   :  { %752 = vmatpush3.bf16.msra.mxu1 %v749_v30  ;;  %722 = vmatprep.subr.bf16.mxu0 %v721_v35 }
  0x5f   :  { %754 = vmatprep.subr.bf16.mxu1 %v753_v36 }
  0x61   :  { %724 = vmatpush3.bf16.msra.mxu0 %v721_v35 }
  0x62   :  { %756 = vmatpush3.bf16.msra.mxu1 %v753_v36  ;;  %726 = vmatprep.subr.bf16.mxu0 %v725_v41 }
  0x63   :  { %758 = vmatprep.subr.bf16.mxu1 %v757_v42 }
  0x65   :  { %728 = vmatpush3.bf16.msra.mxu0 %v725_v41 }
  0x66   :  { %760 = vmatpush3.bf16.msra.mxu1 %v757_v42  ;;  %730 = vmatprep.subr.bf16.mxu0 %v729_v47 }
  0x67   :  { %762 = vmatprep.subr.bf16.mxu1 %v761_v48 }
  0x69   :  { %732 = vmatpush3.bf16.msra.mxu0 %v729_v47 }
  0x6a   :  { %764 = vmatpush3.bf16.msra.mxu1 %v761_v48  ;;  %766 = vmatprep.subr.bf16.mxu0 %v765_v51 }
  0x6b   :  { %797 = vmatprep.subr.bf16.mxu1 %v937_v10 }
  0x6c   :  { %611 = vmatmul.mubr.f32.vlgmr.msra.gmra.mrb[0].mxu0 %v72_v54 }
  0x6d   :  { %646 = vmatmul.mubr.f32.vlgmr.msra.gmra.mrb[0].mxu1 %v72_v54  ;;  %768 = vmatpush3.bf16.msra.mxu0 %v765_v51 }
  0x6e   :  { %770 = vmatprep.subr.bf16.mxu0 %v769_v55  ;;  %680 = vmatprep.mubr.f32.mxu0 %v71_v26 }
  0x6f   :  { %689 = vmatprep.mubr.msk.f32.mxu1 %vm938_vm0, %v939_v11 }
  0x71   :  { %772 = vmatpush3.bf16.msra.mxu0 %v769_v55 }
  0x72   :  { %774 = vmatprep.subr.bf16.mxu0 %v773_v58 }
  0x75   :  { %776 = vmatpush3.bf16.msra.mxu0 %v773_v58 }
  0x76   :  { %778 = vmatprep.subr.bf16.mxu0 %v777_v61 }
  0x79   :  { %780 = vmatpush3.bf16.msra.mxu0 %v777_v61 }
  0x7a   :  { %782 = vmatprep.subr.bf16.mxu0 %v781_v0 }
  0x7d   :  { %784 = vmatpush3.bf16.msra.mxu0 %v781_v0 }
  0x7e   :  { %786 = vmatprep.subr.bf16.mxu0 %v785_v3 }
  0x81   :  { %788 = vmatpush3.bf16.msra.mxu0 %v785_v3 }
  0x82   :  { %790 = vmatprep.subr.bf16.mxu0 %v789_v6 }
  0x85   :  { %792 = vmatpush3.bf16.msra.mxu0 %v789_v6 }
  0x86   :  { %794 = vmatprep.subr.bf16.mxu0 %v793_v9 }
  0x89   :  { %796 = vmatpush3.bf16.msra.mxu0 %v793_v9 }
  0x8c   :  { %681 = vmatmul.mubr.f32.vlgmr.msra.gmra.mrb[2].mxu0 %v72_v54 }
 0x13f   :  { %v612_v12 = vpop.f32.mrb[0].mxu0 }
 0x140   :  { %v647_v13 = vpop.f32.mrb[0].mxu1  ;;  %v155_v14 = vpop.f32.mrb[1].mxu0 }
 0x141   :  { %v801_v15 = vpack.c.bf16 %v647_v13, %v612_v12  ;;  %v247_v16 = vpop.f32.mrb[1].mxu1 }
 0x142   :  { %v798_v17 = vpack.c.bf16 %v247_v16, %v155_v14 }
 0x144   :  { %799 = vmatpush3.bf16.msra.mxu1 %v798_v17 }
 0x145   :  { %687 = vmatprep.subr.mxu1 %v939_v11 }
 0x15f   :  { %v682_v18 = vpop.f32.mrb[2].mxu0 }
 0x160   :  { %v339_v20 = vpop.f32.mrb[3].mxu0 }
 0x161   :  { %688 = vmatpush3.msra.mxu1 %v339_v20 }
 0x162   :  { %690 = vmatmul.mubr.msk.f32.vlgmr.msra.gmra.mrb[2].mxu1 %vm348_vm1, %v69_v19  ;;  %800 = vmatprep.subr.bf16.mxu1 %v937_v10 }
 0x163   :  { %802 = vmatpush3.bf16.msra.mxu1 %v801_v15  ;;  %698 = vmatprep.mubr.msk.f32.mxu1 %vm938_vm0, %v939_v11 }
 0x164   :  { %696 = vmatprep.subr.mxu1 %v939_v11 }
 0x167   :  { %697 = vmatpush3.msra.mxu1 %v682_v18 }
 0x168   :  { %699 = vmatmul.mubr.msk.f32.vlgmr.msra.gmra.mrb[4].mxu1 %vm348_vm1, %v69_v19 }
 0x235   :  { %v418_v22 = vpop.f32.mrb[2].mxu1 }
 0x236   :  { %v419_v23 = vadd.f32 %v418_v22, %v70_v21  ;;  %v691_v24 = vpop.f32.mrb[3].mxu1 }
 0x238   :  { %422 = vst [vmem:[#allocation10] sm:$0xff] %v419_v23 }
 0x23b   :  { %v489_v25 = vpop.f32.mrb[4].mxu1 }
 0x23c   :  { %v490_v26 = vadd.f32 %v489_v25, %v70_v21  ;;  %v700_v27 = vpop.f32.mrb[5].mxu1 }
 0x23e   :  { %494 = vst [vmem:[#allocation10 + $0x8] sm:$0xff] %v490_v26 }
 0x23f   :  { %912 = shalt.err (!%p909_p8)
}
 0x240   :  { %s913_s15 = scalar_lea.hbm %s1055_s4, 256 }
 0x241   :  { %p914_p9 = scmp.ne.s32.totalorder %s1055_s4, %s913_s15  ;;  %p917_p10 = scmp.lt.u32.totalorder %s913_s15, %s1055_s4 }
 0x243   :  { %p919_p11 = pnand %p917_p10, %p914_p9 }
 0x245   :  { %922 = shalt.err (!%p919_p11)
}
 0x246   :  { %506 = dma.vmem_to_hbm [thread:$0]  %s501_s10, 256, %s1055_s4, [#allocation4], %s933_s1, %s933_s1, %s934_s11  }
 0x247   :  { %929 = dma.done.wait [#allocation4], 256  }
 0x248   :  { %930 = vsyncadd [#allocation4], 4294967040 }
 0x249   :  { %510 = vsyncpa [#allocation3], 1 }
 0x24a   :  { %511 = vsyncpa [#allocation6], 1 }
 0x24b   :  { %512 = vsyncpa [#allocation9], 1 }
 0x24c   :  { %513 = vsyncpa [#allocation4], 1 }

</bundles_post_ra>
